<compile_context>
chip_gen: v5e
topology: v5e:2x2
jax: 0.10.0
libtpu: 0.0.40
codegen_flags: <defaults>
</compile_context>

<pallas_src>
import jax
import jax.numpy as jnp
from jax.experimental import pallas as pl
from jax.experimental.pallas import tpu as pltpu

B = 2            # batch
C = 3            # image channels
H = W = 16       # spatial size
D = C * H * W    # 768 (multiple of 128)
HID = 128        # backbone hidden width
R = 8            # detection proposals per image
K = 10           # MNIST classes
RK = R * K       # 80 (all-proposal logits per image)


def _detect_kernel(img_ref, w1_ref, b1_ref, w2_ref, b2_ref, out_ref):
    # img_ref : (B, D)     f32  flattened images (bf16 cast happens here, on the VPU)
    # w1_ref  : (D, HID)   bf16 backbone weight
    # b1_ref  : (1, HID)   f32  backbone bias
    # w2_ref  : (HID, RK)  bf16 head weights, all proposals flattened lane-wise
    # b2_ref  : (1, RK)    f32  head biases, all proposals
    # out_ref : (B, RK)    f32  class logits for every proposal of every image
    img_bf = img_ref[...].astype(jnp.bfloat16)
    h = jnp.dot(img_bf, w1_ref[...], preferred_element_type=jnp.float32)
    h = jnp.maximum(h + b1_ref[...], 0.0)                  # (B, HID) f32, ReLU
    h_bf = h.astype(jnp.bfloat16)
    # Single MXU push for the whole head: (B, HID) @ (HID, R*K) -> (B, R*K).
    logits = jnp.dot(h_bf, w2_ref[...], preferred_element_type=jnp.float32)
    out_ref[...] = logits + b2_ref[...]


def prep_net_params(w1, b1, w2, b2):
    """One-time weight preparation (hoisted out of the per-call wrapper)."""
    w1_bf = w1.astype(jnp.bfloat16)                                        # (D, HID)
    b1_2d = b1.reshape(1, HID).astype(jnp.float32)                         # (1, HID)
    # w2: (R, HID, K) -> (HID, R*K) with [h, r*K + k] = w2[r, h, k]; no class-dim padding.
    w2_mat = jnp.transpose(w2, (1, 0, 2)).reshape(HID, RK).astype(jnp.bfloat16)
    b2_flat = b2.reshape(1, RK).astype(jnp.float32)                        # (1, RK)
    return w1_bf, b1_2d, w2_mat, b2_flat


@jax.jit
def mnist_detect_wrapper(inp, w1_bf, b1_2d, w2_mat, b2_flat):
    """inp: [B, 2, C, H, W] float32. Returns [B, K] selected class logits."""
    # torch: number = input[:, 1, :, :][:, 0, 0, 0].to(long)  (truncation toward zero)
    number = jnp.clip(inp[:, 1, 0, 0, 0].astype(jnp.int32), 0, R - 1)  # clamp vs IndexError
    img2d = inp[:, 0].reshape(B, D)                 # f32 view; bf16 cast done in-kernel

    all_logits = pl.pallas_call(
        _detect_kernel,
        out_shape=jax.ShapeDtypeStruct((B, RK), jnp.float32),
        grid=(1,),                                  # single step: whole batch at once
        in_specs=[
            pl.BlockSpec((B, D), lambda i: (0, 0)),        # images
            pl.BlockSpec((D, HID), lambda i: (0, 0)),      # W1
            pl.BlockSpec((1, HID), lambda i: (0, 0)),      # b1
            pl.BlockSpec((HID, RK), lambda i: (0, 0)),     # W2 (all proposals, unpadded)
            pl.BlockSpec((1, RK), lambda i: (0, 0)),       # b2 (all proposals)
        ],
        out_specs=pl.BlockSpec((B, RK), lambda i: (0, 0)),
        compiler_params=pltpu.CompilerParams(dimension_semantics=("arbitrary",)),
    )(img2d, w1_bf, b1_2d, w2_mat, b2_flat)

    # Tiny per-batch proposal gather on a (B, R, K) array (fused into this jit).
    out3 = all_logits.reshape(B, R, K)
    return jnp.take_along_axis(out3, number[:, None, None], axis=1)[:, 0, :]   # (B, K)


def reference(inp, w1, b1, w2, b2):
    """Pure-JAX reference mirroring the wrapper forward with the same bf16 policy."""
    img = inp[:, 0].reshape(B, D)
    number = jnp.clip(inp[:, 1, 0, 0, 0].astype(jnp.int32), 0, R - 1)
    img_bf = img.astype(jnp.bfloat16).astype(jnp.float32)
    w1f = w1.astype(jnp.bfloat16).astype(jnp.float32)
    w2f = w2.astype(jnp.bfloat16).astype(jnp.float32)
    h = jnp.maximum(jnp.dot(img_bf, w1f, precision="highest") + b1, 0.0)     # (B, HID)
    hb = h.astype(jnp.bfloat16).astype(jnp.float32)
    logits = jnp.einsum("bh,rhk->brk", hb, w2f, precision="highest") + b2[None]  # (B,R,K)
    return jnp.stack([logits[b, number[b]] for b in range(B)])               # (B, K)


if __name__ == "__main__":
    key = jax.random.PRNGKey(0)
    k_img, k_w1, k_b1, k_w2, k_b2 = jax.random.split(key, 5)

    # Deterministic synthetic net parameters.
    w1 = jax.random.normal(k_w1, (D, HID), jnp.float32) * 0.05
    b1 = jax.random.normal(k_b1, (HID,), jnp.float32) * 0.05
    w2 = jax.random.normal(k_w2, (R, HID, K), jnp.float32) * 0.05
    b2 = jax.random.normal(k_b2, (R, K), jnp.float32) * 0.05

    # One-time weight prep (amortized across calls, per performance review).
    prepped = prep_net_params(w1, b1, w2, b2)
    prepped = tuple(jax.block_until_ready(p) for p in prepped)

    # Build input [B, 2, C, H, W]: channel 0 = image, channel 1 = proposal index plane.
    img = jax.random.normal(k_img, (B, C, H, W), jnp.float32)
    numbers = jnp.array([3, 5], dtype=jnp.float32)                        # in [0, R)
    number_plane = jnp.broadcast_to(numbers[:, None, None, None], (B, C, H, W))
    inp = jnp.stack([img, number_plane], axis=1)                          # [B, 2, C, H, W]

    out = mnist_detect_wrapper(inp, *prepped)
    out = jax.block_until_ready(out)

    ref = reference(inp, w1, b1, w2, b2)
    assert out.shape == (B, K)
    assert jnp.allclose(out, ref, atol=5e-3, rtol=5e-3), "mismatch vs reference"
    print("KERNEL_OK")
</pallas_src>

<mosaic_0001>
module attributes {stable_mosaic.version = 11 : i64} {
  func.func @_detect_kernel(%arg0: i32, %arg1: memref<2x768xf32, #tpu.memory_space<vmem>>, %arg2: memref<768x128xbf16, #tpu.memory_space<vmem>>, %arg3: memref<1x128xf32, #tpu.memory_space<vmem>>, %arg4: memref<128x80xbf16, #tpu.memory_space<vmem>>, %arg5: memref<1x80xf32, #tpu.memory_space<vmem>>, %arg6: memref<2x80xf32, #tpu.memory_space<vmem>>) attributes {dimension_semantics = [#tpu.dimension_semantics<arbitrary>], iteration_bounds = array<i64: 1>, scalar_prefetch = 0 : i64, scratch_operands = 0 : i64, tpu.core_type = #tpu.core_type<tc>, window_params = [{pipeline_mode = #tpu.pipeline_mode<synchronous>, transform_indices = @transform_0, window_bounds = array<i64: 2, 768>}, {pipeline_mode = #tpu.pipeline_mode<synchronous>, transform_indices = @transform_1, window_bounds = array<i64: 768, 128>}, {pipeline_mode = #tpu.pipeline_mode<synchronous>, transform_indices = @transform_2, window_bounds = array<i64: 1, 128>}, {pipeline_mode = #tpu.pipeline_mode<synchronous>, transform_indices = @transform_3, window_bounds = array<i64: 128, 80>}, {pipeline_mode = #tpu.pipeline_mode<synchronous>, transform_indices = @transform_4, window_bounds = array<i64: 1, 80>}, {pipeline_mode = #tpu.pipeline_mode<synchronous>, transform_indices = @transform_5, window_bounds = array<i64: 2, 80>}]} {
    %c0 = arith.constant 0 : index
    %c0_0 = arith.constant 0 : index
    %0 = vector.load %arg1[%c0, %c0_0] : memref<2x768xf32, #tpu.memory_space<vmem>>, vector<2x768xf32>
    %1 = arith.truncf %0 : vector<2x768xf32> to vector<2x768xbf16>
    %c0_1 = arith.constant 0 : index
    %c0_2 = arith.constant 0 : index
    %2 = vector.load %arg2[%c0_1, %c0_2] : memref<768x128xbf16, #tpu.memory_space<vmem>>, vector<768x128xbf16>
    %cst = arith.constant dense<0.000000e+00> : vector<2x128xf32>
    %3 = tpu.matmul %1, %2, %cst {dimension_numbers = #tpu.dot_dimension_numbers<[1], [0], [0], [1], [0, 0, 1, 1], [], []>} : vector<2x768xbf16>, vector<768x128xbf16>, vector<2x128xf32> -> vector<2x128xf32>
    %c0_3 = arith.constant 0 : index
    %c0_4 = arith.constant 0 : index
    %4 = vector.load %arg3[%c0_3, %c0_4] : memref<1x128xf32, #tpu.memory_space<vmem>>, vector<1x128xf32>
    %5 = vector.broadcast %4 : vector<1x128xf32> to vector<2x128xf32>
    %6 = arith.addf %3, %5 : vector<2x128xf32>
    %cst_5 = arith.constant 0.000000e+00 : f32
    %7 = vector.broadcast %cst_5 : f32 to vector<2x128xf32>
    %8 = arith.maximumf %6, %7 : vector<2x128xf32>
    %9 = arith.truncf %8 : vector<2x128xf32> to vector<2x128xbf16>
    %c0_6 = arith.constant 0 : index
    %c0_7 = arith.constant 0 : index
    %10 = vector.load %arg4[%c0_6, %c0_7] : memref<128x80xbf16, #tpu.memory_space<vmem>>, vector<128x80xbf16>
    %cst_8 = arith.constant dense<0.000000e+00> : vector<2x80xf32>
    %11 = tpu.matmul %9, %10, %cst_8 {dimension_numbers = #tpu.dot_dimension_numbers<[1], [0], [0], [1], [0, 0, 1, 1], [], []>} : vector<2x128xbf16>, vector<128x80xbf16>, vector<2x80xf32> -> vector<2x80xf32>
    %c0_9 = arith.constant 0 : index
    %c0_10 = arith.constant 0 : index
    %12 = vector.load %arg5[%c0_9, %c0_10] : memref<1x80xf32, #tpu.memory_space<vmem>>, vector<1x80xf32>
    %13 = vector.broadcast %12 : vector<1x80xf32> to vector<2x80xf32>
    %14 = arith.addf %11, %13 : vector<2x80xf32>
    %c0_11 = arith.constant 0 : index
    %c0_12 = arith.constant 0 : index
    %15 = vector.load %arg6[%c0_11, %c0_12] : memref<2x80xf32, #tpu.memory_space<vmem>>, vector<2x80xf32>
    tpu.vector_store %arg6[%c0_11, %c0_12], %14 {strides = array<i32>} : memref<2x80xf32, #tpu.memory_space<vmem>>, vector<2x80xf32>,
    return
  }
  func.func @transform_0(%arg0: i32) -> (i32, i32) {
    %c0_i32 = arith.constant 0 : i32
    %c0_i32_0 = arith.constant 0 : i32
    %c0_i32_1 = arith.constant 0 : i32
    return %c0_i32, %c0_i32_0 : i32, i32
  }
  func.func @transform_1(%arg0: i32) -> (i32, i32) {
    %c0_i32 = arith.constant 0 : i32
    %c0_i32_0 = arith.constant 0 : i32
    %c0_i32_1 = arith.constant 0 : i32
    return %c0_i32, %c0_i32_0 : i32, i32
  }
  func.func @transform_2(%arg0: i32) -> (i32, i32) {
    %c0_i32 = arith.constant 0 : i32
    %c0_i32_0 = arith.constant 0 : i32
    %c0_i32_1 = arith.constant 0 : i32
    return %c0_i32, %c0_i32_0 : i32, i32
  }
  func.func @transform_3(%arg0: i32) -> (i32, i32) {
    %c0_i32 = arith.constant 0 : i32
    %c0_i32_0 = arith.constant 0 : i32
    %c0_i32_1 = arith.constant 0 : i32
    return %c0_i32, %c0_i32_0 : i32, i32
  }
  func.func @transform_4(%arg0: i32) -> (i32, i32) {
    %c0_i32 = arith.constant 0 : i32
    %c0_i32_0 = arith.constant 0 : i32
    %c0_i32_1 = arith.constant 0 : i32
    return %c0_i32, %c0_i32_0 : i32, i32
  }
  func.func @transform_5(%arg0: i32) -> (i32, i32) {
    %c0_i32 = arith.constant 0 : i32
    %c0_i32_0 = arith.constant 0 : i32
    %c0_i32_1 = arith.constant 0 : i32
    return %c0_i32, %c0_i32_0 : i32, i32
  }
}

</mosaic_0001>

<bundles_post_ra>
// kernel: squeeze.4
= control target key start
LH: loop header
LB: loop body
LE: loop exit
PB: predicated region body
PF: predicated region fallthrough
CT: control target
= control target key end

     0   :  { %vm22_vm0 = vcmask 1043458   ;;  %vm27_vm1 = vcmask 1045508   ;;  %vm32_vm2 = vcmask 1047558   ;;  %s60_s6 = smov 3  ;;  %s63_s7 = smov 12  ;;  %vm4_vm3 = vcmask 1047556   ;;  %s632_s0 = inlined_call_operand.vmem [shape: f32[2,1,3,16,16], index: 0, kind: input, shape index: {}]   ;;  %s633_s1 = inlined_call_operand.vmem [shape: f32[2,768], index: 1, kind: output, shape index: {}]  }
   0x1   :  { %v360_v0 = vld [vmem:[%s632_s0 + $0x6] ss:$48 sm:%s60_s6]   ;;  %v361_v1 = vld [vmem:[%s632_s0 - $0x52] ss:$48 sm:%s63_s7]   ;;  %s68_s12 = smov 48  ;;  %s73_s13 = smov 192 }
   0x2   :  { %v66_v2 = vsel %vm22_vm0, %v361_v1, %v360_v0  ;;  %v362_v3 = vld [vmem:[%s632_s0 - $0xaa] ss:$48 sm:%s68_s12]   ;;  %v363_v4 = vld [vmem:[%s632_s0 - $0x102] ss:$48 sm:%s73_s13]   ;;  %s17_s18 = smov 3  ;;  %s20_s21 = smov 12 }
   0x3   :  { %v71_v5 = vsel %vm27_vm1, %v362_v3, %v66_v2  ;;  %v354_v6 = vld [vmem:[%s632_s0 + $0x7] ss:$48 sm:%s17_s18]   ;;  %s25_s22 = smov 48  ;;  %v355_v8 = vld [vmem:[%s632_s0 - $0x51] ss:$48 sm:%s20_s21]   ;;  %s30_s27 = smov 192 }
   0x4   :  { %v76_v7 = vsel %vm32_vm2, %v363_v4, %v71_v5  ;;  %v356_v9 = vld [vmem:[%s632_s0 - $0xa9] ss:$48 sm:%s25_s22]   ;;  %s408_s28 = smov 96   ;;  %v23_v10 = vsel %vm22_vm0, %v355_v8, %v354_v6  ;;  %v357_v11 = vld [vmem:[%s632_s0 - $0x101] ss:$48 sm:%s30_s27]   ;;  %s88_s2 = smov 3 }
   0x5   :  { %77 = vrot.lane.b32.xlu1 %v76_v7, %s408_s28  ;;  %s91_s3 = smov 12  ;;  %v28_v12 = vsel %vm27_vm1, %v356_v9, %v23_v10  ;;  %v364_v14 = vld [vmem:[%s632_s0 + $0x26] ss:$48 sm:%s88_s2]   ;;  %s45_s8 = smov 3  ;;  %vm6_vm4 = vcmask 130048   ;;  %vm36_vm5 = vcmask 1048448  }
   0x6   :  { %v33_v13 = vsel %vm32_vm2, %v357_v11, %v28_v12  ;;  %v365_v15 = vld [vmem:[%s632_s0 - $0x32] ss:$48 sm:%s91_s3]   ;;  %s48_s9 = smov 12  ;;  %s409_s10 = smov 112   ;;  %v358_v17 = vld [vmem:[%s632_s0 + $0x27] ss:$48 sm:%s45_s8]  }
   0x7   :  { %34 = vrot.lane.b32.xlu0 %v33_v13, %s409_s10  ;;  %s146_s11 = smov 3  ;;  %s149_s12 = smov 12  ;;  %v94_v16 = vsel %vm22_vm0, %v365_v15, %v364_v14  ;;  %v359_v18 = vld [vmem:[%s632_s0 - $0x31] ss:$48 sm:%s48_s9]   ;;  %vm79_vm6 = vcmask 917248   ;;  %vm122_vm7 = vcmask 786048  }
   0x8   :  { %s174_s17 = smov 3  ;;  %s177_s18 = smov 12  ;;  %v372_v19 = vld [vmem:[%s632_s0 + $0x4] ss:$48 sm:%s146_s11]   ;;  %v373_v20 = vld [vmem:[%s632_s0 - $0x54] ss:$48 sm:%s149_s12]   ;;  %v51_v21 = vsel %vm22_vm0, %v359_v18, %v358_v17 }
   0x9   :  { %s154_s19 = smov 48  ;;  %s232_s24 = smov 3  ;;  %v376_v22 = vld [vmem:[%s632_s0 + $0x24] ss:$48 sm:%s174_s17]   ;;  %v377_v23 = vld [vmem:[%s632_s0 - $0x34] ss:$48 sm:%s177_s18]   ;;  %v152_v25 = vsel %vm22_vm0, %v373_v20, %v372_v19 }
   0xa   :  { %s235_s25 = smov 12  ;;  %v374_v24 = vld [vmem:[%s632_s0 - $0xac] ss:$48 sm:%s154_s19]   ;;  %s159_s3 = smov 192  ;;  %v384_v26 = vld [vmem:[%s632_s0 + $0x2] ss:$48 sm:%s232_s24]   ;;  %v180_v33 = vsel %vm22_vm0, %v377_v23, %v376_v22 }
   0xb   :  { %s103_s4 = smov 3  ;;  %v385_v27 = vld [vmem:[%s632_s0 - $0x56] ss:$48 sm:%s235_s25]   ;;  %s106_s12 = smov 12  ;;  %v157_v34 = vsel %vm27_vm1, %v374_v24, %v152_v25  ;;  %v375_v35 = vld [vmem:[%s632_s0 - $0x104] ss:$48 sm:%s159_s3]  }
   0xc   :  { %v366_v28 = vld [vmem:[%s632_s0 + $0x5] ss:$48 sm:%s103_s4]   ;;  %s111_s13 = smov 48  ;;  %v367_v29 = vld [vmem:[%s632_s0 - $0x53] ss:$48 sm:%s106_s12]   ;;  %s116_s15 = smov 192  ;;  %v238_v38 = vsel %vm22_vm0, %v385_v27, %v384_v26  ;;  %v162_v40 = vsel %vm32_vm2, %v375_v35, %v157_v34 }
   0xd   :  { %95 = vrot.lane.b32.xlu1 %v94_v16, %s408_s28  ;;  %s240_s16 = smov 48  ;;  %v109_v30 = vsel %vm22_vm0, %v367_v29, %v366_v28  ;;  %v368_v31 = vld [vmem:[%s632_s0 - $0xab] ss:$48 sm:%s111_s13]   ;;  %s245_s23 = smov 192  ;;  %vm165_vm8 = vcmask 654848   ;;  %vm208_vm9 = vcmask 523648  }
   0xe   :  { %v369_v32 = vld [vmem:[%s632_s0 - $0x103] ss:$48 sm:%s116_s15]   ;;  %v114_v36 = vsel %vm27_vm1, %v368_v31, %v109_v30  ;;  %v386_v39 = vld [vmem:[%s632_s0 - $0xae] ss:$48 sm:%s240_s16]   ;;  %s410_s26 = smov 80   ;;  %s131_s27 = smov 3 }
   0xf   :  { %52 = vrot.lane.b32.xlu0 %v51_v21, %s409_s10  ;;  %v119_v37 = vsel %vm32_vm2, %v369_v32, %v114_v36  ;;  %s411_s28 = smov 64   ;;  %s134_s29 = smov 12  ;;  %v387_v41 = vld [vmem:[%s632_s0 - $0x106] ss:$48 sm:%s245_s23]   ;;  %v243_v43 = vsel %vm27_vm1, %v386_v39, %v238_v38  ;;  %vm251_vm10 = vcmask 392448   ;;  %vm294_vm11 = vcmask 261248  }
  0x10   :  { %120 = vrot.lane.b32.xlu2 %v119_v37, %s410_s26  ;;  %s189_s30 = smov 3  ;;  %v370_v42 = vld [vmem:[%s632_s0 + $0x25] ss:$48 sm:%s131_s27]   ;;  %s192_s6 = smov 12  ;;  %v248_v48 = vsel %vm32_vm2, %v387_v41, %v243_v43 }
  0x11   :  { %s217_s7 = smov 3  ;;  %s220_s8 = smov 12  ;;  %v371_v44 = vld [vmem:[%s632_s0 - $0x33] ss:$48 sm:%s134_s29]   ;;  %v378_v45 = vld [vmem:[%s632_s0 + $0x3] ss:$48 sm:%s189_s30]  }
  0x12   :  { %s275_s10 = smov 3  ;;  %v379_v46 = vld [vmem:[%s632_s0 - $0x55] ss:$48 sm:%s192_s6]   ;;  %s197_s16 = smov 48  ;;  %v137_v47 = vsel %vm22_vm0, %v371_v44, %v370_v42  ;;  %v382_v49 = vld [vmem:[%s632_s0 + $0x23] ss:$48 sm:%s217_s7]  }
  0x13   :  { %s278_s17 = smov 12  ;;  %v383_v50 = vld [vmem:[%s632_s0 - $0x35] ss:$48 sm:%s220_s8]   ;;  %s303_s22 = smov 3  ;;  %v390_v51 = vld [vmem:[%s632_s0 + $0x1] ss:$48 sm:%s275_s10]   ;;  %v195_v52 = vsel %vm22_vm0, %v379_v46, %v378_v45 }
  0x14   :  { %v380_v53 = vld [vmem:[%s632_s0 - $0xad] ss:$48 sm:%s197_s16]   ;;  %s306_s29 = smov 12  ;;  %v391_v54 = vld [vmem:[%s632_s0 - $0x57] ss:$48 sm:%s278_s17]   ;;  %s283_s3 = smov 48  ;;  %v223_v55 = vsel %vm22_vm0, %v383_v50, %v382_v49 }
  0x15   :  { %181 = vrot.lane.b32.xlu1 %v180_v33, %s411_s28  ;;  %v394_v56 = vld [vmem:[%s632_s0 + $0x21] ss:$48 sm:%s303_s22]   ;;  %v200_v57 = vsel %vm27_vm1, %v380_v53, %v195_v52  ;;  %v281_v60 = vsel %vm22_vm0, %v391_v54, %v390_v51  ;;  %s288_s13 = smov 192  ;;  %s413_s10 = smov 48  }
  0x16   :  { %v395_v59 = vld [vmem:[%s632_s0 - $0x37] ss:$48 sm:%s306_s29]   ;;  %v392_v61 = vld [vmem:[%s632_s0 - $0xaf] ss:$48 sm:%s283_s3]   ;;  %s260_s16 = smov 3  ;;  %s263_s17 = smov 12 }
  0x17   :  { %163 = vrot.lane.b32.xlu0 %v162_v40, %s411_s28  ;;  %s202_s28 = smov 192  ;;  %v309_v63 = vsel %vm22_vm0, %v395_v59, %v394_v56  ;;  %v286_v0 = vsel %vm27_vm1, %v392_v61, %v281_v60  ;;  %v393_v1 = vld [vmem:[%s632_s0 - $0x107] ss:$48 sm:%s288_s13]   ;;  %s414_s18 = smov 16  }
  0x18   :  { %138 = vrot.lane.b32.xlu2 %v137_v47, %s410_s26  ;;  %s412_s26 = smov 32   ;;  %v381_v58 = vld [vmem:[%s632_s0 - $0x105] ss:$48 sm:%s202_s28]   ;;  %v291_v2 = vsel %vm32_vm2, %v393_v1, %v286_v0  ;;  %v2_v6 = vld [vmem:[%s632_s0] ss:$8 sm:$0xf]  }
  0x19   :  { %v205_v62 = vsel %vm32_vm2, %v381_v58, %v200_v57  ;;  %v388_v3 = vld [vmem:[%s632_s0 + $0x22] ss:$48 sm:%s260_s16]   ;;  %v389_v4 = vld [vmem:[%s632_s0 - $0x36] ss:$48 sm:%s263_s17]  }
  0x1a   :  { %v266_v5 = vsel %vm22_vm0, %v389_v4, %v388_v3  ;;  %v3_v7 = vld [vmem:[%s632_s0] ss:$8 sm:$0xf0]  }
  0x1b   :  { %v353_v8 = vld [vmem:[%s632_s0 + $0x40] ss:$8 sm:$0xf]   ;;  %v5_v9 = vsel %vm4_vm3, %v3_v7, %v2_v6 }
  0x1c   :  { %15 = vst.msk [vmem:[#allocation0 + $0x11] ss:$8 sm:$0xf] %vm6_vm4, %v353_v8  }
  0x1d   :  { %249 = vrot.lane.b32.xlu1 %v248_v48, %s412_s26  ;;  %7 = vst.msk [vmem:[#allocation0] ss:$8 sm:$0xf] %vm6_vm4, %v5_v9  }
  0x1e   :  { %10 = vst.msk [vmem:[#allocation0 - $0x2f] ss:$8 sm:$0xc0] %vm6_vm4, %v5_v9  }
  0x1f   :  { %224 = vrot.lane.b32.xlu0 %v223_v55, %s413_s10  ;;  %8 = vst.msk [vmem:[#allocation0] ss:$8 sm:$0x30] %vm6_vm4, %v5_v9  }
  0x20   :  { %206 = vrot.lane.b32.xlu2 %v205_v62, %s413_s10 }
  0x25   :  { %310 = vrot.lane.b32.xlu1 %v309_v63, %s414_s18 }
  0x27   :  { %292 = vrot.lane.b32.xlu0 %v291_v2, %s414_s18 }
  0x28   :  { %267 = vrot.lane.b32.xlu2 %v266_v5, %s412_s26 }
  0x6a   :  { %v121_v10 = vpop.permute.xlu2 %120  }
  0x72   :  { %v139_v11 = vpop.permute.xlu2 %138  }
  0x77   :  { %v78_v12 = vpop.permute.xlu1 %77  }
  0x79   :  { %v35_v13 = vpop.permute.xlu0 %34  }
  0x7a   :  { %37 = vst.msk [vmem:[#allocation0] sm:$0x3] %vm36_vm5, %v35_v13   ;;  %v207_v14 = vpop.permute.xlu2 %206  }
  0x7b   :  { %39 = vst.msk [vmem:[#allocation0 + $0x6] sm:$0xc] %vm36_vm5, %v35_v13  }
  0x7c   :  { %41 = vst.msk [vmem:[#allocation0 + $0xc] sm:$0x30] %vm36_vm5, %v35_v13  }
  0x7d   :  { %43 = vst.msk [vmem:[#allocation0 + $0x12] sm:$0xc0] %vm36_vm5, %v35_v13  }
  0x7e   :  { %80 = vst.msk [vmem:[#allocation0] sm:$0x3] %vm79_vm6, %v78_v12  }
  0x7f   :  { %v96_v15 = vpop.permute.xlu1 %95   ;;  %82 = vst.msk [vmem:[#allocation0 + $0x6] sm:$0xc] %vm79_vm6, %v78_v12  }
  0x80   :  { %84 = vst.msk [vmem:[#allocation0 + $0xc] sm:$0x30] %vm79_vm6, %v78_v12  }
  0x81   :  { %86 = vst.msk [vmem:[#allocation0 + $0x12] sm:$0xc0] %vm79_vm6, %v78_v12   ;;  %v53_v16 = vpop.permute.xlu0 %52  }
  0x82   :  { %123 = vst.msk [vmem:[#allocation0] sm:$0x3] %vm122_vm7, %v121_v10   ;;  %v268_v17 = vpop.permute.xlu2 %267  }
  0x83   :  { %125 = vst.msk [vmem:[#allocation0 + $0x6] sm:$0xc] %vm122_vm7, %v121_v10  }
  0x84   :  { %127 = vst.msk [vmem:[#allocation0 + $0xc] sm:$0x30] %vm122_vm7, %v121_v10  }
  0x85   :  { %129 = vst.msk [vmem:[#allocation0 + $0x12] sm:$0xc0] %vm122_vm7, %v121_v10  }
  0x86   :  { %56 = vst.msk [vmem:[#allocation0 + $0x20] sm:$0x3] %vm36_vm5, %v53_v16  }
  0x87   :  { %v182_v18 = vpop.permute.xlu1 %181   ;;  %58 = vst.msk [vmem:[#allocation0 + $0x26] sm:$0xc] %vm36_vm5, %v53_v16  }
  0x88   :  { %99 = vst.msk [vmem:[#allocation0 + $0x20] sm:$0x3] %vm79_vm6, %v96_v15  }
  0x89   :  { %101 = vst.msk [vmem:[#allocation0 + $0x26] sm:$0xc] %vm79_vm6, %v96_v15   ;;  %v164_v19 = vpop.permute.xlu0 %163  }
  0x8a   :  { %142 = vst.msk [vmem:[#allocation0 + $0x20] sm:$0x3] %vm122_vm7, %v139_v11  }
  0x8b   :  { %144 = vst.msk [vmem:[#allocation0 + $0x26] sm:$0xc] %vm122_vm7, %v139_v11  }
  0x8c   :  { %185 = vst.msk [vmem:[#allocation0 + $0x20] sm:$0x3] %vm165_vm8, %v182_v18  }
  0x8d   :  { %187 = vst.msk [vmem:[#allocation0 + $0x26] sm:$0xc] %vm165_vm8, %v182_v18  }
  0x8e   :  { %166 = vst.msk [vmem:[#allocation0] sm:$0x3] %vm165_vm8, %v164_v19  }
  0x8f   :  { %v250_v20 = vpop.permute.xlu1 %249   ;;  %168 = vst.msk [vmem:[#allocation0 + $0x6] sm:$0xc] %vm165_vm8, %v164_v19  }
  0x90   :  { %170 = vst.msk [vmem:[#allocation0 + $0xc] sm:$0x30] %vm165_vm8, %v164_v19  }
  0x91   :  { %172 = vst.msk [vmem:[#allocation0 + $0x12] sm:$0xc0] %vm165_vm8, %v164_v19   ;;  %v225_v21 = vpop.permute.xlu0 %224  }
  0x92   :  { %209 = vst.msk [vmem:[#allocation0] sm:$0x3] %vm208_vm9, %v207_v14  }
  0x93   :  { %211 = vst.msk [vmem:[#allocation0 + $0x6] sm:$0xc] %vm208_vm9, %v207_v14  }
  0x94   :  { %213 = vst.msk [vmem:[#allocation0 + $0xc] sm:$0x30] %vm208_vm9, %v207_v14  }
  0x95   :  { %215 = vst.msk [vmem:[#allocation0 + $0x12] sm:$0xc0] %vm208_vm9, %v207_v14  }
  0x96   :  { %252 = vst.msk [vmem:[#allocation0] sm:$0x3] %vm251_vm10, %v250_v20  }
  0x97   :  { %v311_v22 = vpop.permute.xlu1 %310   ;;  %254 = vst.msk [vmem:[#allocation0 + $0x6] sm:$0xc] %vm251_vm10, %v250_v20  }
  0x98   :  { %256 = vst.msk [vmem:[#allocation0 + $0xc] sm:$0x30] %vm251_vm10, %v250_v20  }
  0x99   :  { %258 = vst.msk [vmem:[#allocation0 + $0x12] sm:$0xc0] %vm251_vm10, %v250_v20   ;;  %v293_v23 = vpop.permute.xlu0 %292  }
  0x9a   :  { %228 = vst.msk [vmem:[#allocation0 + $0x20] sm:$0x3] %vm208_vm9, %v225_v21  }
  0x9b   :  { %230 = vst.msk [vmem:[#allocation0 + $0x26] sm:$0xc] %vm208_vm9, %v225_v21  }
  0x9c   :  { %271 = vst.msk [vmem:[#allocation0 + $0x20] sm:$0x3] %vm251_vm10, %v268_v17  }
  0x9d   :  { %273 = vst.msk [vmem:[#allocation0 + $0x26] sm:$0xc] %vm251_vm10, %v268_v17  }
  0x9e   :  { %314 = vst.msk [vmem:[#allocation0 + $0x20] sm:$0x3] %vm294_vm11, %v311_v22  }
  0x9f   :  { %316 = vst.msk [vmem:[#allocation0 + $0x26] sm:$0xc] %vm294_vm11, %v311_v22  }
  0xa0   :  { %295 = vst.msk [vmem:[#allocation0] sm:$0x3] %vm294_vm11, %v293_v23  }
  0xa1   :  { %297 = vst.msk [vmem:[#allocation0 + $0x6] sm:$0xc] %vm294_vm11, %v293_v23  }
  0xa2   :  { %299 = vst.msk [vmem:[#allocation0 + $0xc] sm:$0x30] %vm294_vm11, %v293_v23  }
  0xa3   :  { %301 = vst.msk [vmem:[#allocation0 + $0x12] sm:$0xc0] %vm294_vm11, %v293_v23  }
  0xa5   :  { %v342_v24 = vld [vmem:[#allocation0 + $0x20] sm:$0x3] }
  0xa6   :  { %399 = vst [vmem:[%s633_s1 + $0x8] sm:$0x3] %v342_v24  ;;  %v348_v25 = vld [vmem:[#allocation0 + $0x28] sm:$0x3] }
  0xa7   :  { %400 = vst [vmem:[%s633_s1 + $0xa] sm:$0x3] %v348_v25  ;;  %v319_v26 = vld [vmem:[#allocation0] sm:$0x3] }
  0xa8   :  { %322 = vst [vmem:[%s633_s1] sm:$0x3] %v319_v26  ;;  %v324_v27 = vld [vmem:[#allocation0 + $0x8] sm:$0x3] }
  0xa9   :  { %396 = vst [vmem:[%s633_s1 + $0x2] sm:$0x3] %v324_v27  ;;  %v330_v28 = vld [vmem:[#allocation0 + $0x10] sm:$0x3] }
  0xaa   :  { %397 = vst [vmem:[%s633_s1 + $0x4] sm:$0x3] %v330_v28  ;;  %v336_v29 = vld [vmem:[#allocation0 + $0x18] sm:$0x3] }
  0xab   :  { %398 = vst [vmem:[%s633_s1 + $0x6] sm:$0x3] %v336_v29 }

// kernel: mnist_detect_wrapper.1
= control target key start
LH: loop header
LB: loop body
LE: loop exit
PB: predicated region body
PF: predicated region fallthrough
CT: control target
= control target key end

     0   :  { %10 = vsyncpa [#allocation3], 0  ;;  %s928_s21 = smov [#allocation2]   ;;  %s929_s23 = smov 64   ;;  %s1003_s0 = inlined_call_operand.vmem [shape: f32[2,768], index: 0, kind: input, shape index: {}]   ;;  %s1004_s1 = inlined_call_operand.hbm [shape: bf16[768,128], index: 1, kind: input, shape index: {}]   ;;  %s1005_s2 = inlined_call_operand.vmem [shape: f32[1,128], index: 2, kind: input, shape index: {}]   ;;  %s1006_s3 = inlined_call_operand.vmem [shape: bf16[128,80], index: 3, kind: input, shape index: {}]   ;;  %s1007_s4 = inlined_call_operand.vmem [shape: f32[1,80], index: 4, kind: input, shape index: {}]   ;;  %s1008_s5 = inlined_call_operand.vmem [shape: f32[2,80], index: 5, kind: output, shape index: {}]  }
   0x1   :  { %s17_s20 = sshll.u32 %s1004_s1, 4  ;;  %s19_s22 = sshll.u32 %s928_s21, 4  ;;  %s18_s20 = int_to_ptr.hbm [resolvable:$true] %s17_s20  ;;  %s20_s22 = int_to_ptr.vmem [resolvable:$true] %s19_s22 }
   0x2   :  { %s930_s24 = smov 4  }
   0x3   :  { %25 = dma.hbm_to_vmem [thread:$0]  %s18_s20, 6144, %s20_s22, [#allocation3], %s929_s23, %s929_s23, %s930_s24  }
   0x4   :  { %926 = dma.done.wait [#allocation3], 6144  }
   0x5   :  { %927 = vsyncadd [#allocation3], 4294961152  ;;  %v848_v0 = vld [vmem:[#allocation2 + $0x38] sm:$0xff]  ;;  %v847_v2 = vld [vmem:[#allocation2 + $0x30] sm:$0xff]  ;;  %vm610_vm0 = vcmask 648192  }
   0x6   :  { %v856_v1 = vld [vmem:[#allocation2 + $0x78] sm:$0xff]  ;;  %449 = vmatpush.bf16.msra.mxu0 %v848_v0  ;;  %v855_v3 = vld [vmem:[#allocation2 + $0x70] sm:$0xff]  ;;  %v846_v8 = vld [vmem:[#allocation2 + $0x28] sm:$0xff] }
   0x7   :  { %462 = vmatpush.bf16.msra.mxu1 %v856_v1  ;;  %v864_v4 = vld [vmem:[#allocation2 + $0xb8] sm:$0xff]  ;;  %v863_v6 = vld [vmem:[#allocation2 + $0xb0] sm:$0xff]  ;;  %v854_v9 = vld [vmem:[#allocation2 + $0x68] sm:$0xff] }
   0x8   :  { %v872_v5 = vld [vmem:[#allocation2 + $0xf8] sm:$0xff]  ;;  %475 = vmatpush.bf16.msra.mxu2 %v864_v4  ;;  %v871_v7 = vld [vmem:[#allocation2 + $0xf0] sm:$0xff]  ;;  %v862_v10 = vld [vmem:[#allocation2 + $0xa8] sm:$0xff] }
   0x9   :  { %488 = vmatpush.bf16.msra.mxu3 %v872_v5  ;;  %v870_v11 = vld [vmem:[#allocation2 + $0xe8] sm:$0xff]  ;;  %v845_v12 = vld [vmem:[#allocation2 + $0x20] sm:$0xff]  ;;  %v36_v14 = vld [vmem:[%s1003_s0] sm:$0xff] }
   0xa   :  { %450 = vmatpush.bf16.msra.mxu0 %v847_v2  ;;  %v853_v13 = vld [vmem:[#allocation2 + $0x60] sm:$0xff]  ;;  %40 = vst [vmem:[#allocation1] ss:$4 sm:$0xff] %v36_v14  ;;  %v844_v16 = vld [vmem:[#allocation2 + $0x18] sm:$0xff]  ;;  %v843_v21 = vld [vmem:[#allocation2 + $0x10] sm:$0xff] }
   0xb   :  { %463 = vmatpush.bf16.msra.mxu1 %v855_v3  ;;  %v861_v15 = vld [vmem:[#allocation2 + $0xa0] sm:$0xff]  ;;  %v852_v18 = vld [vmem:[#allocation2 + $0x58] sm:$0xff]  ;;  %v851_v22 = vld [vmem:[#allocation2 + $0x50] sm:$0xff] }
   0xc   :  { %476 = vmatpush.bf16.msra.mxu2 %v863_v6  ;;  %v869_v17 = vld [vmem:[#allocation2 + $0xe0] sm:$0xff]  ;;  %v860_v19 = vld [vmem:[#allocation2 + $0x98] sm:$0xff]  ;;  %v859_v23 = vld [vmem:[#allocation2 + $0x90] sm:$0xff] }
   0xd   :  { %489 = vmatpush.bf16.msra.mxu3 %v871_v7  ;;  %v868_v20 = vld [vmem:[#allocation2 + $0xd8] sm:$0xff]  ;;  %v867_v24 = vld [vmem:[#allocation2 + $0xd0] sm:$0xff]  ;;  %v37_v25 = vld [vmem:[%s1003_s0 + $0x8] sm:$0xf] }
   0xe   :  { %451 = vmatpush.bf16.msra.mxu0 %v846_v8  ;;  %v842_v26 = vld [vmem:[#allocation2 + $0x8] sm:$0xff]  ;;  %42 = vst [vmem:[#allocation1 + $0x20] ss:$4 sm:$0xff] %v37_v25  ;;  %v841_v29 = vld [vmem:[#allocation2] sm:$0xff]  ;;  %v880_v34 = vld [vmem:[#allocation2 + $0x138] sm:$0xff] }
   0xf   :  { %464 = vmatpush.bf16.msra.mxu1 %v854_v9  ;;  %v850_v27 = vld [vmem:[#allocation2 + $0x48] sm:$0xff]  ;;  %v849_v30 = vld [vmem:[#allocation2 + $0x40] sm:$0xff]  ;;  %v888_v35 = vld [vmem:[#allocation2 + $0x178] sm:$0xff] }
  0x10   :  { %477 = vmatpush.bf16.msra.mxu2 %v862_v10  ;;  %v858_v28 = vld [vmem:[#allocation2 + $0x88] sm:$0xff]  ;;  %v857_v36 = vld [vmem:[#allocation2 + $0x80] sm:$0xff]  ;;  %v879_v42 = vld [vmem:[#allocation2 + $0x130] sm:$0xff] }
  0x11   :  { %490 = vmatpush.bf16.msra.mxu3 %v870_v11  ;;  %v866_v31 = vld [vmem:[#allocation2 + $0xc8] sm:$0xff]  ;;  %v43_v32 = vld.sshfl [vmem:[#allocation1] sm:$0xff pattern:$0x73625140]  ;;  %v865_v40 = vld [vmem:[#allocation2 + $0xc0] sm:$0xff] }
  0x12   :  { %452 = vmatpush.bf16.msra.mxu0 %v845_v12  ;;  %v44_v33 = vld.sshfl [vmem:[#allocation1 + $0x8] sm:$0xff pattern:$0x73625140]  ;;  %v55_v37 = vpack.c.bf16 %v43_v32, %v43_v32  ;;  %v45_v39 = vld.sshfl [vmem:[#allocation1 + $0x10] sm:$0xff pattern:$0x73625140] }
  0x13   :  { %465 = vmatpush.bf16.msra.mxu1 %v853_v13  ;;  %v56_v38 = vpack.c.bf16 %v44_v33, %v44_v33  ;;  %v46_v41 = vld.sshfl [vmem:[#allocation1 + $0x18] sm:$0xff pattern:$0x73625140]  ;;  %v57_v44 = vpack.c.bf16 %v45_v39, %v45_v39  ;;  %v878_v46 = vld [vmem:[#allocation2 + $0x128] sm:$0xff]  ;;  %v877_v48 = vld [vmem:[#allocation2 + $0x120] sm:$0xff] }
  0x14   :  { %478 = vmatpush.bf16.msra.mxu2 %v861_v15  ;;  %v887_v43 = vld [vmem:[#allocation2 + $0x170] sm:$0xff]  ;;  %v58_v45 = vpack.c.bf16 %v46_v41, %v46_v41  ;;  %v886_v47 = vld [vmem:[#allocation2 + $0x168] sm:$0xff]  ;;  %v885_v49 = vld [vmem:[#allocation2 + $0x160] sm:$0xff] }
  0x15   :  { %491 = vmatpush.bf16.msra.mxu3 %v869_v17  ;;  %v876_v50 = vld [vmem:[#allocation2 + $0x118] sm:$0xff]  ;;  %v875_v52 = vld [vmem:[#allocation2 + $0x110] sm:$0xff]  ;;  %v874_v54 = vld [vmem:[#allocation2 + $0x108] sm:$0xff] }
  0x16   :  { %453 = vmatpush.bf16.msra.mxu0 %v844_v16  ;;  %v884_v51 = vld [vmem:[#allocation2 + $0x158] sm:$0xff]  ;;  %v883_v53 = vld [vmem:[#allocation2 + $0x150] sm:$0xff]  ;;  %v882_v55 = vld [vmem:[#allocation2 + $0x148] sm:$0xff] }
  0x17   :  { %466 = vmatpush.bf16.msra.mxu1 %v852_v18  ;;  %v873_v56 = vld [vmem:[#allocation2 + $0x100] sm:$0xff]  ;;  %v47_v58 = vld.sshfl [vmem:[#allocation1 + $0x20] sm:$0xff pattern:$0x73625140]  ;;  %v896_v62 = vld [vmem:[%s1006_s3 + $0x38] sm:$0xff] }
  0x18   :  { %479 = vmatpush.bf16.msra.mxu2 %v860_v19  ;;  %v881_v57 = vld [vmem:[#allocation2 + $0x140] sm:$0xff]  ;;  %v59_v60 = vpack.c.bf16 %v47_v58, %v47_v58  ;;  %v895_v63 = vld [vmem:[%s1006_s3 + $0x30] sm:$0xff]  ;;  %v893_v1 = vld [vmem:[%s1006_s3 + $0x20] sm:$0xff] }
  0x19   :  { %492 = vmatpush.bf16.msra.mxu3 %v868_v20  ;;  %v48_v59 = vld.sshfl [vmem:[#allocation1 + $0x28] sm:$0xff pattern:$0x73625140]  ;;  %v892_v2 = vld [vmem:[%s1006_s3 + $0x18] sm:$0xff]  ;;  %v891_v3 = vld [vmem:[%s1006_s3 + $0x10] sm:$0xff] }
  0x1a   :  { %454 = vmatpush.bf16.msra.mxu0 %v843_v21  ;;  %v60_v61 = vpack.c.bf16 %v48_v59, %v48_v59  ;;  %v894_v0 = vld [vmem:[%s1006_s3 + $0x28] sm:$0xff]  ;;  %v889_v7 = vld [vmem:[%s1006_s3] sm:$0xff] }
  0x1b   :  { %467 = vmatpush.bf16.msra.mxu1 %v851_v22  ;;  %v890_v4 = vld [vmem:[%s1006_s3 + $0x8] sm:$0xff]  ;;  %v900_v12 = vld [vmem:[%s1005_s2] ss:$0 sm:$0xff] }
  0x1c   :  { %480 = vmatpush.bf16.msra.mxu2 %v859_v23 }
  0x1d   :  { %493 = vmatpush.bf16.msra.mxu3 %v867_v24 }
  0x1e   :  { %455 = vmatpush.bf16.msra.mxu0 %v842_v26 }
  0x1f   :  { %468 = vmatpush.bf16.msra.mxu1 %v850_v27  ;;  %v901_v27 = vld [vmem:[%s1007_s4] ss:$0 sm:$0xff] }
  0x20   :  { %481 = vmatpush.bf16.msra.mxu2 %v858_v28 }
  0x21   :  { %494 = vmatpush.bf16.msra.mxu3 %v866_v31 }
  0x22   :  { %456 = vmatpush.bf16.msra.mxu0 %v841_v29 }
  0x23   :  { %469 = vmatpush.bf16.msra.mxu1 %v849_v30 }
  0x24   :  { %482 = vmatpush.bf16.msra.mxu2 %v857_v36 }
  0x25   :  { %457 = vmatmul.bf16.vlgmr.msra.gmra.mxu0 %v55_v37  ;;  %495 = vmatpush.bf16.msra.mxu3 %v865_v40 }
  0x26   :  { %501 = vmatpush.bf16.msrb.mxu0 %v880_v34  ;;  %470 = vmatmul.bf16.vlgmr.msra.gmra.mxu1 %v56_v38 }
  0x27   :  { %514 = vmatpush.bf16.msrb.mxu1 %v888_v35  ;;  %483 = vmatmul.bf16.vlgmr.msra.gmra.mxu2 %v57_v44 }
  0x28   :  { %496 = vmatmul.bf16.vlgmr.msra.gmra.mxu3 %v58_v45  ;;  %597 = vmatpush.bf16.msrb.mxu2 %v896_v62 }
  0x2a   :  { %502 = vmatpush.bf16.msrb.mxu0 %v879_v42 }
  0x2b   :  { %515 = vmatpush.bf16.msrb.mxu1 %v887_v43 }
  0x2c   :  { %598 = vmatpush.bf16.msrb.mxu2 %v895_v63 }
  0x2e   :  { %503 = vmatpush.bf16.msrb.mxu0 %v878_v46 }
  0x2f   :  { %516 = vmatpush.bf16.msrb.mxu1 %v886_v47 }
  0x30   :  { %599 = vmatpush.bf16.msrb.mxu2 %v894_v0 }
  0x32   :  { %504 = vmatpush.bf16.msrb.mxu0 %v877_v48 }
  0x33   :  { %517 = vmatpush.bf16.msrb.mxu1 %v885_v49 }
  0x34   :  { %600 = vmatpush.bf16.msrb.mxu2 %v893_v1 }
  0x36   :  { %505 = vmatpush.bf16.msrb.mxu0 %v876_v50 }
  0x37   :  { %518 = vmatpush.bf16.msrb.mxu1 %v884_v51 }
  0x38   :  { %601 = vmatpush.bf16.msrb.mxu2 %v892_v2 }
  0x3a   :  { %506 = vmatpush.bf16.msrb.mxu0 %v875_v52 }
  0x3b   :  { %519 = vmatpush.bf16.msrb.mxu1 %v883_v53 }
  0x3c   :  { %602 = vmatpush.bf16.msrb.mxu2 %v891_v3 }
  0x3e   :  { %507 = vmatpush.bf16.msrb.mxu0 %v874_v54 }
  0x3f   :  { %520 = vmatpush.bf16.msrb.mxu1 %v882_v55 }
  0x40   :  { %603 = vmatpush.bf16.msrb.mxu2 %v890_v4 }
  0x42   :  { %508 = vmatpush.bf16.msrb.mxu0 %v873_v56 }
  0x43   :  { %521 = vmatpush.bf16.msrb.mxu1 %v881_v57 }
  0x44   :  { %604 = vmatpush.bf16.msrb.mxu2 %v889_v7 }
  0x45   :  { %509 = vmatmul.bf16.vlgmr.msrb.gmra.mxu0 %v59_v60 }
  0x46   :  { %522 = vmatmul.bf16.vlgmr.msrb.gmra.mxu1 %v60_v61 }
  0xa2   :  { %v458_v5 = vpop.f32.mrf.mxu0 }
  0xa3   :  { %v471_v6 = vpop.f32.mrf.mxu1  ;;  %v459_v13 = vadd.f32 %v900_v12, %v458_v5 }
  0xa5   :  { %v472_v16 = vadd.f32 %v471_v6, %v459_v13 }
  0xaa   :  { %v460_v8 = vpop.f32.mrf.mxu0  ;;  %v484_v10 = vpop.f32.mrf.mxu2 }
  0xab   :  { %v473_v9 = vpop.f32.mrf.mxu1  ;;  %v497_v11 = vpop.f32.mrf.mxu3  ;;  %v485_v17 = vadd.f32 %v484_v10, %v472_v16 }
  0xad   :  { %v498_v18 = vadd.f32 %v497_v11, %v485_v17 }
  0xb2   :  { %v486_v14 = vpop.f32.mrf.mxu2 }
  0xb3   :  { %v499_v15 = vpop.f32.mrf.mxu3 }
  0xc2   :  { %v510_v19 = vpop.f32.mrf.mxu0 }
  0xc3   :  { %v523_v20 = vpop.f32.mrf.mxu1  ;;  %v511_v21 = vadd.f32 %v510_v19, %v498_v18 }
  0xc5   :  { %v524_v22 = vadd.f32 %v523_v20, %v511_v21 }
  0xc7   :  { %v527_v23 = vmax.f32 %v524_v22, 0.0 }
  0xc9   :  { %v528_v24 = vpack.c.bf16 %v527_v23, %v527_v23 }
  0xca   :  { %v512_v25 = vpop.f32.mrf.mxu0 }
  0xcb   :  { %v525_v26 = vpop.f32.mrf.mxu1  ;;  %605 = vmatmul.bf16.vlgmr.msrb.gmra.mxu2 %v528_v24 }
 0x14e   :  { %v606_v28 = vpop.f32.mrf.mxu2 }
 0x14f   :  { %v607_v29 = vadd.f32 %v901_v27, %v606_v28 }
 0x151   :  { %611 = vst.msk [vmem:[%s1008_s5] sm:$0x3] %vm610_vm0, %v607_v29 }
 0x156   :  { %v608_v30 = vpop.f32.mrf.mxu2 }
 0x157   :  { %616 = vsyncpa [#allocation3], 1 }

</bundles_post_ra>
